<compile_context>
chip_gen: v7x
topology: tpu7x:2x2x1
jax: 0.10.0
libtpu: 0.0.40
codegen_flags: <defaults>
</compile_context>

<pallas_src>
import functools

import jax
import jax.numpy as jnp
from jax import lax
from jax.experimental import pallas as pl
from jax.experimental.pallas import tpu as pltpu

F32 = jnp.float32
BF16 = jnp.bfloat16

LANE = 128            # lane width: pad all feature dims to a multiple of this
ROW_TILE = 512        # node-row / K tile for the N x N propagation


def _round_up(x, m):
    return ((x + m - 1) // m) * m


def _pad2(a, rows, cols, dtype):
    out = jnp.zeros((rows, cols), dtype)
    return out.at[:a.shape[0], :a.shape[1]].set(a.astype(dtype))


@functools.lru_cache(maxsize=1)
def _vmem_limit():
    # ~75% of physical VMEM per generation (v5e/v6e: 128 MiB -> 96 MiB,
    # v7x: 64 MiB -> 48 MiB), capped; falls back to the v7x-safe value.
    try:
        cap = int(pltpu.get_tpu_info().vmem_capacity_bytes)
    except Exception:
        cap = 64 * 1024 * 1024
    return min(int(cap * 3 // 4), 100 * 1024 * 1024)


def _cparams(dim_sem=None):
    return pltpu.CompilerParams(dimension_semantics=dim_sem,
                                vmem_limit_bytes=_vmem_limit())


# --------------------------------------------------------------------------- #
# Fused GCN layer kernel.
#   acc(i)       = sum_k A_hat[i,k] @ Z[k]          (bf16 MXU, f32 accumulation)
#   h(i)         = acc(i) [@ W_post] + b            (f32 epilogue, last K step)
#   pool_part(i) = pool[:, i-block] @ h(i)          (per-row-block partial mean pool)
#   z_next(i)    = h(i) @ W_next  (bf16 store)      (next layer's propagation input)
# grid = (row blocks, K blocks); rows "parallel" (megacore-shardable), K "arbitrary".
# h never touches HBM; only bf16 z_next and the tiny pool partials are written.
# --------------------------------------------------------------------------- #
def _layer_kernel(*refs, has_post, has_next, resident_z, tk):
    it = iter(refs)
    adj_ref = next(it)
    z_ref = next(it)
    b_ref = next(it)
    pool_ref = next(it)
    w_post_ref = next(it) if has_post else None
    w_next_ref = next(it) if has_next else None
    pool_part_ref = next(it)
    z_next_ref = next(it) if has_next else None
    acc_ref = next(it)

    k = pl.program_id(1)

    @pl.when(k == 0)
    def _init():
        acc_ref[...] = jnp.zeros_like(acc_ref)

    if resident_z:                       # whole Z resident in VMEM: slice the K block
        start = pl.multiple_of(k * tk, tk)
        z_blk = z_ref[pl.ds(start, tk), :]
    else:                                # Z streamed per K block
        z_blk = z_ref[...]
    acc_ref[...] += jnp.dot(adj_ref[...], z_blk, preferred_element_type=F32)

    @pl.when(k == pl.num_programs(1) - 1)
    def _finalize():
        acc = acc_ref[...]
        if has_post:                     # layer-1 (A_hat @ X) @ W1 association
            h = jnp.dot(acc.astype(BF16), w_post_ref[...],
                        preferred_element_type=F32) + b_ref[...]
        else:
            h = acc + b_ref[...]
        h_bf = h.astype(BF16)
        pp = jnp.dot(pool_ref[...], h_bf, preferred_element_type=F32)
        pool_part_ref[...] = pp.reshape(pool_part_ref.shape)
        if has_next:
            z_next_ref[...] = jnp.dot(h_bf, w_next_ref[...],
                                      preferred_element_type=F32).astype(BF16)


def _gcn_layer(adj_p, z_bf16, bias_f32, pool_bf16, w_post, w_next, tm, tk,
               resident_z):
    n_pad = adj_p.shape[0]
    c_in = z_bf16.shape[1]
    hp = bias_f32.shape[1]
    g_pad = pool_bf16.shape[0]
    n_i, n_k = n_pad // tm, n_pad // tk
    has_post = w_post is not None
    has_next = w_next is not None

    in_specs = [pl.BlockSpec((tm, tk), lambda i, k: (i, k))]            # A_hat tile
    args = [adj_p]
    if resident_z:                                                      # resident Z
        in_specs.append(pl.BlockSpec((n_pad, c_in), lambda i, k: (0, 0)))
    else:                                                               # streamed Z
        in_specs.append(pl.BlockSpec((tk, c_in), lambda i, k: (k, 0)))
    args.append(z_bf16)
    in_specs.append(pl.BlockSpec((1, hp), lambda i, k: (0, 0)))         # bias
    args.append(bias_f32)
    in_specs.append(pl.BlockSpec((g_pad, tm), lambda i, k: (0, i)))     # pool columns
    args.append(pool_bf16)
    if has_post:
        in_specs.append(pl.BlockSpec(w_post.shape, lambda i, k: (0, 0)))
        args.append(w_post)
    if has_next:
        in_specs.append(pl.BlockSpec(w_next.shape, lambda i, k: (0, 0)))
        args.append(w_next)

    pp_shape = jax.ShapeDtypeStruct((n_i, g_pad, hp), F32)
    pp_spec = pl.BlockSpec((1, g_pad, hp), lambda i, k: (i, 0, 0))
    if has_next:
        out_shape = (pp_shape, jax.ShapeDtypeStruct((n_pad, hp), BF16))
        out_specs = (pp_spec, pl.BlockSpec((tm, hp), lambda i, k: (i, 0)))
    else:
        out_shape = pp_shape
        out_specs = pp_spec

    flops = (2 * n_pad * n_pad * c_in + 2 * g_pad * n_pad * hp
             + (2 * n_pad * c_in * hp if has_post else 0)
             + (2 * n_pad * hp * hp if has_next else 0))
    bytes_acc = (n_pad * n_pad * 2
                 + (1 if resident_z else n_i) * n_pad * c_in * 2
                 + g_pad * n_pad * 2 + n_i * g_pad * hp * 4
                 + (n_pad * hp * 2 if has_next else 0))

    kernel = functools.partial(_layer_kernel, has_post=has_post,
                               has_next=has_next, resident_z=resident_z, tk=tk)
    out = pl.pallas_call(
        kernel,
        out_shape=out_shape,
        grid_spec=pltpu.PrefetchScalarGridSpec(
            num_scalar_prefetch=0,
            grid=(n_i, n_k),
            in_specs=in_specs,
            out_specs=out_specs,
            scratch_shapes=[pltpu.VMEM((tm, c_in), F32)]),
        compiler_params=_cparams(("parallel", "arbitrary")),
        cost_estimate=pl.CostEstimate(flops=int(flops), transcendentals=0,
                                      bytes_accessed=int(bytes_acc)),
    )(*args)

    if has_next:
        pool_parts, z_next = out
    else:
        pool_parts, z_next = out, None
    # tiny per-row-block partial sum (keeps the row grid axis "parallel" on v7x)
    return jnp.sum(pool_parts, axis=0), z_next


# --------------------------------------------------------------------------- #
# Row-tiled dense transform (only used for layer 1 when in_feats > dim_h):
# z1 = X @ W1 (bf16 output, f32 accumulation).
# --------------------------------------------------------------------------- #
def _transform_kernel(x_ref, w_ref, out_ref):
    out_ref[...] = jnp.dot(x_ref[...], w_ref[...],
                           preferred_element_type=F32).astype(out_ref.dtype)


def _transform(x_bf16, w_bf16, tm):
    n, cin = x_bf16.shape
    cout = w_bf16.shape[1]
    return pl.pallas_call(
        _transform_kernel,
        out_shape=jax.ShapeDtypeStruct((n, cout), BF16),
        grid_spec=pltpu.PrefetchScalarGridSpec(
            num_scalar_prefetch=0,
            grid=(n // tm,),
            in_specs=[pl.BlockSpec((tm, cin), lambda i: (i, 0)),
                      pl.BlockSpec((cin, cout), lambda i: (0, 0))],
            out_specs=pl.BlockSpec((tm, cout), lambda i: (i, 0))),
        compiler_params=_cparams(("parallel",)),
        cost_estimate=pl.CostEstimate(
            flops=int(2 * n * cin * cout), transcendentals=0,
            bytes_accessed=int(n * cin * 2 + cin * cout * 2 + n * cout * 2)),
    )(x_bf16, w_bf16)


# --------------------------------------------------------------------------- #
# MLP head (gridless, tiny): lin1 on concat(m1,m2,m3) via split-row matmuls
# -> ReLU -> (Dropout = identity in eval) -> lin2 -> masked log_softmax.
# --------------------------------------------------------------------------- #
def _head_kernel(output_dim, m1_ref, m2_ref, m3_ref,
                 lw1a_ref, lw1b_ref, lw1c_ref, lb1_ref, lw2_ref, lb2_ref,
                 h_ref, logp_ref):
    z = (jnp.dot(m1_ref[...], lw1a_ref[...], preferred_element_type=F32)
         + jnp.dot(m2_ref[...], lw1b_ref[...], preferred_element_type=F32)
         + jnp.dot(m3_ref[...], lw1c_ref[...], preferred_element_type=F32)
         + lb1_ref[...])
    z = jnp.maximum(z, 0.0)  # ReLU
    # TODO(synk): F.dropout(p=0.5) is identity in eval mode; training-mode RNG dropout omitted.
    logits = jnp.dot(z, lw2_ref[...], preferred_element_type=F32) + lb2_ref[...]
    h_ref[...] = logits

    # log_softmax over the first `output_dim` lanes (rest is padding)
    lane = lax.broadcasted_iota(jnp.int32, logits.shape, 1)
    masked = jnp.where(lane < output_dim, logits, -1e30)
    mmax = jnp.max(masked, axis=1, keepdims=True)
    lse = jnp.log(jnp.sum(jnp.exp(masked - mmax), axis=1, keepdims=True)) + mmax
    logp_ref[...] = logits - lse


def _head(m1, m2, m3, lw1a, lw1b, lw1c, lb1, lw2, lb2, output_dim):
    g_pad = m1.shape[0]
    op = lw2.shape[1]
    return pl.pallas_call(
        functools.partial(_head_kernel, output_dim),
        out_shape=(jax.ShapeDtypeStruct((g_pad, op), F32),
                   jax.ShapeDtypeStruct((g_pad, op), F32)),
        compiler_params=_cparams(),
    )(m1, m2, m3, lw1a, lw1b, lw1c, lb1, lw2, lb2)


# ------------------------------ JAX glue / wrapper ---------------------------- #
def build_normalized_adjacency_padded(edge_index, num_nodes, n_pad):
    """bf16 A_hat = D^-1/2 (A+I) D^-1/2 (PyG gcn_norm, add_self_loops=True),
    scattered directly into the padded (n_pad, n_pad) buffer (single f32 pass)."""
    src, dst = edge_index[0], edge_index[1]
    loops = jnp.arange(num_nodes, dtype=edge_index.dtype)
    src = jnp.concatenate([src, loops])
    dst = jnp.concatenate([dst, loops])
    a = jnp.zeros((n_pad, n_pad), F32).at[dst, src].add(1.0)
    deg = jnp.sum(a, axis=1)
    d = jnp.where(deg > 0, lax.rsqrt(deg), 0.0)
    return (d[:, None] * a * d[None, :]).astype(BF16)


def build_mean_pool_matrix_padded(batch, num_graphs, g_pad, n_pad):
    onehot = (batch[None, :] == jnp.arange(num_graphs)[:, None]).astype(F32)  # (G, N)
    pool = onehot / jnp.maximum(jnp.sum(onehot, axis=1, keepdims=True), 1.0)
    return _pad2(pool, g_pad, n_pad, BF16)   # 1/count values are exact in bf16 for small counts


def fixed_gcn_forward(x, edge_index, batch, params, num_graphs):
    (w1, b1, w2, b2, w3, b3, lw1, lb1, lw2, lb2) = params
    n, in_feats = x.shape
    dim_h = w1.shape[1]
    output_dim = lw2.shape[1]

    # lane-dense padded shapes
    fp = _round_up(in_feats, LANE)
    hp = _round_up(dim_h, LANE)
    h3p = _round_up(3 * dim_h, LANE)
    op = _round_up(output_dim, LANE)
    g_pad = _round_up(num_graphs, 8)

    if n <= ROW_TILE:
        n_pad = _round_up(n, LANE)
        tm = tk = n_pad
    else:
        n_pad = _round_up(n, ROW_TILE)     # n_pad/tm >= 2 as soon as N > ROW_TILE (v7x megacore)
        tm = tk = ROW_TILE

    # Resident-Z gate: keep the whole activation stream in VMEM only if it fits the
    # per-generation scoped budget (assume the pipeline double-buffers it).
    cmax = max(fp, hp)
    resident_bytes = (2 * n_pad * cmax * 2       # resident Z (x2 buffers)
                      + 2 * tm * tk * 2          # adjacency tile (double buffered)
                      + 2 * tm * hp * 2          # z_next output block
                      + 2 * g_pad * tm * 2       # pool block
                      + tm * cmax * 4            # f32 accumulator
                      + (fp + hp) * hp * 2       # resident weights
                      + 2 * g_pad * hp * 4)      # pool-partial output block
    resident_z = resident_bytes <= int(0.7 * _vmem_limit())

    # graph-structure setup (scatter / normalization / pooling matrix) is plain-JAX glue
    adj_p = build_normalized_adjacency_padded(edge_index, n, n_pad)          # (n_pad, n_pad) bf16
    pool_p = build_mean_pool_matrix_padded(batch, num_graphs, g_pad, n_pad)  # (g_pad, n_pad) bf16
    x_p = _pad2(x, n_pad, fp, BF16)

    w1_p = _pad2(w1, fp, hp, BF16); b1_p = _pad2(b1, 1, hp, F32)
    w2_p = _pad2(w2, hp, hp, BF16); b2_p = _pad2(b2, 1, hp, F32)
    w3_p = _pad2(w3, hp, hp, BF16); b3_p = _pad2(b3, 1, hp, F32)

    lw1a = _pad2(lw1[0 * dim_h:1 * dim_h], hp, h3p, F32)
    lw1b = _pad2(lw1[1 * dim_h:2 * dim_h], hp, h3p, F32)
    lw1c = _pad2(lw1[2 * dim_h:3 * dim_h], hp, h3p, F32)
    lb1_p = _pad2(lb1, 1, h3p, F32)
    lw2_p = _pad2(lw2, h3p, op, F32)
    lb2_p = _pad2(lb2, 1, op, F32)

    layer = functools.partial(_gcn_layer, adj_p, tm=tm, tk=tk,
                              resident_z=resident_z)

    # layer 1: keep the N^2 matmul at the narrower width (associativity is exact)
    if fp <= hp:
        m1, z2 = layer(x_p, b1_p, pool_p, w_post=w1_p, w_next=w2_p)   # (A X) W1 + b1
    else:
        z1 = _transform(x_p, w1_p, tm)                                # X W1 (bf16)
        m1, z2 = layer(z1, b1_p, pool_p, w_post=None, w_next=w2_p)    # A (X W1) + b1

    # layers 2, 3 (no activation between convs, matching the original module)
    m2, z3 = layer(z2, b2_p, pool_p, w_post=None, w_next=w3_p)
    m3, _ = layer(z3, b3_p, pool_p, w_post=None, w_next=None)

    # MLP head + masked log_softmax
    h_pad, logp_pad = _head(m1, m2, m3, lw1a, lw1b, lw1c,
                            lb1_p, lw2_p, lb2_p, output_dim)
    return (h_pad[:num_graphs, :output_dim],
            logp_pad[:num_graphs, :output_dim])


# ------------------------------- reference / demo ----------------------------- #
def _reference_forward(x, edge_index, batch, params, num_graphs):
    (w1, b1, w2, b2, w3, b3, lw1, lb1, lw2, lb2) = params
    n = x.shape[0]
    src, dst = edge_index[0], edge_index[1]
    loops = jnp.arange(n, dtype=edge_index.dtype)
    src = jnp.concatenate([src, loops])
    dst = jnp.concatenate([dst, loops])
    a = jnp.zeros((n, n), F32).at[dst, src].add(1.0)
    deg = jnp.sum(a, axis=1)
    dis = jnp.where(deg > 0, 1.0 / jnp.sqrt(deg), 0.0)
    adj = dis[:, None] * a * dis[None, :]
    onehot = (batch[None, :] == jnp.arange(num_graphs)[:, None]).astype(F32)
    pool = onehot / jnp.maximum(jnp.sum(onehot, axis=1, keepdims=True), 1.0)

    h1 = adj @ (x @ w1) + b1
    h2 = adj @ (h1 @ w2) + b2
    h3 = adj @ (h2 @ w3) + b3
    m = jnp.concatenate([pool @ h1, pool @ h2, pool @ h3], axis=1)
    z = jnp.maximum(m @ lw1 + lb1, 0.0)
    logits = z @ lw2 + lb2
    return logits, jax.nn.log_softmax(logits, axis=1)


def init_params(key, in_feats, dim_h, output_dim):
    hops = 3
    ks = jax.random.split(key, 10)
    scale = 0.1

    def w(k, shape):
        return (scale * jax.random.normal(k, shape)).astype(F32)

    w1 = w(ks[0], (in_feats, dim_h)); b1 = w(ks[1], (1, dim_h))
    w2 = w(ks[2], (dim_h, dim_h));    b2 = w(ks[3], (1, dim_h))
    w3 = w(ks[4], (dim_h, dim_h));    b3 = w(ks[5], (1, dim_h))
    lw1 = w(ks[6], (dim_h * hops, dim_h * hops)); lb1 = w(ks[7], (1, dim_h * hops))
    lw2 = w(ks[8], (dim_h * hops, output_dim));   lb2 = w(ks[9], (1, output_dim))
    return (w1, b1, w2, b2, w3, b3, lw1, lb1, lw2, lb2)


if __name__ == "__main__":
    key = jax.random.PRNGKey(0)
    k_x, k_p = jax.random.split(key)

    # Two graphs of 8 nodes each (bidirectional ring per graph).
    nodes_per_graph, num_graphs = 8, 2
    N = nodes_per_graph * num_graphs
    in_feats, dim_h, output_dim = 8, 32, 4

    x = jax.random.normal(k_x, (N, in_feats)).astype(F32)

    srcs, dsts = [], []
    for g in range(num_graphs):
        off = g * nodes_per_graph
        for i in range(nodes_per_graph):
            j = (i + 1) % nodes_per_graph
            srcs += [off + i, off + j]
            dsts += [off + j, off + i]
    edge_index = jnp.array([srcs, dsts], dtype=jnp.int32)  # (2, E)
    batch = jnp.repeat(jnp.arange(num_graphs, dtype=jnp.int32), nodes_per_graph)

    params = init_params(k_p, in_feats, dim_h, output_dim)

    h, logp = fixed_gcn_forward(x, edge_index, batch, params, num_graphs)
    jax.block_until_ready((h, logp))

    assert h.shape == (num_graphs, output_dim)
    assert logp.shape == (num_graphs, output_dim)
    # log_softmax rows must exp-sum to 1
    assert bool(jnp.allclose(jnp.sum(jnp.exp(logp), axis=1), 1.0, atol=1e-5))

    # f32 plain-JAX reference (bf16 matmul inputs -> loose tolerance)
    h_ref, logp_ref = _reference_forward(x, edge_index, batch, params, num_graphs)
    assert bool(jnp.allclose(h, h_ref, atol=5e-2, rtol=5e-2))
    assert bool(jnp.allclose(logp, logp_ref, atol=5e-2, rtol=5e-2))

    print("KERNEL_OK")
</pallas_src>

<mosaic_0001>
module attributes {stable_mosaic.version = 11 : i64} {
  func.func @_layer_kernel(%arg0: i32, %arg1: i32, %arg2: memref<128x128xbf16, #tpu.memory_space<vmem>>, %arg3: memref<128x128xbf16, #tpu.memory_space<vmem>>, %arg4: memref<1x128xf32, #tpu.memory_space<vmem>>, %arg5: memref<8x128xbf16, #tpu.memory_space<vmem>>, %arg6: memref<128x128xbf16, #tpu.memory_space<vmem>>, %arg7: memref<128x128xbf16, #tpu.memory_space<vmem>>, %arg8: memref<1x8x128xf32, #tpu.memory_space<vmem>>, %arg9: memref<128x128xbf16, #tpu.memory_space<vmem>>, %arg10: memref<128x128xf32, #tpu.memory_space<vmem>>) attributes {dimension_semantics = [#tpu.dimension_semantics<parallel>, #tpu.dimension_semantics<arbitrary>], iteration_bounds = array<i64: 1, 1>, scalar_prefetch = 0 : i64, scratch_operands = 1 : i64, tpu.core_type = #tpu.core_type<tc>, window_params = [{transform_indices = @transform_0, window_bounds = array<i64: 128, 128>}, {pipeline_mode = #tpu.pipeline_mode<synchronous>, transform_indices = @transform_1, window_bounds = array<i64: 128, 128>}, {pipeline_mode = #tpu.pipeline_mode<synchronous>, transform_indices = @transform_2, window_bounds = array<i64: 1, 128>}, {transform_indices = @transform_3, window_bounds = array<i64: 8, 128>}, {pipeline_mode = #tpu.pipeline_mode<synchronous>, transform_indices = @transform_4, window_bounds = array<i64: 128, 128>}, {pipeline_mode = #tpu.pipeline_mode<synchronous>, transform_indices = @transform_5, window_bounds = array<i64: 128, 128>}, {transform_indices = @transform_6, window_bounds = array<i64: 1, 8, 128>}, {transform_indices = @transform_7, window_bounds = array<i64: 128, 128>}]} {
    %c0_i32 = arith.constant 0 : i32
    %0 = arith.cmpi eq, %arg1, %c0_i32 : i32
    %1 = arith.extui %0 : i1 to i32
    %c0_i32_0 = arith.constant 0 : i32
    %2 = arith.cmpi ne, %1, %c0_i32_0 : i32
    scf.if %2 {
      %cst_9 = arith.constant 0.000000e+00 : f32
      %15 = vector.broadcast %cst_9 : f32 to vector<128x128xf32>
      %c0_10 = arith.constant 0 : index
      %c0_11 = arith.constant 0 : index
      %16 = vector.load %arg10[%c0_10, %c0_11] : memref<128x128xf32, #tpu.memory_space<vmem>>, vector<128x128xf32>
      tpu.vector_store %arg10[%c0_10, %c0_11], %15 {strides = array<i32>} : memref<128x128xf32, #tpu.memory_space<vmem>>, vector<128x128xf32>,
    } else {
    }
    %c128_i32 = arith.constant 128 : i32
    %3 = arith.muli %arg1, %c128_i32 : i32
    %4 = tpu.assume_multiple %3, 128 : i32
    %5 = arith.index_cast %4 : i32 to index
    %c0 = arith.constant 0 : index
    %6 = vector.load %arg3[%5, %c0] : memref<128x128xbf16, #tpu.memory_space<vmem>>, vector<128x128xbf16>
    %c0_1 = arith.constant 0 : index
    %c0_2 = arith.constant 0 : index
    %7 = vector.load %arg10[%c0_1, %c0_2] : memref<128x128xf32, #tpu.memory_space<vmem>>, vector<128x128xf32>
    %c0_3 = arith.constant 0 : index
    %c0_4 = arith.constant 0 : index
    %8 = vector.load %arg2[%c0_3, %c0_4] : memref<128x128xbf16, #tpu.memory_space<vmem>>, vector<128x128xbf16>
    %cst = arith.constant dense<0.000000e+00> : vector<128x128xf32>
    %9 = tpu.matmul %8, %6, %cst {dimension_numbers = #tpu.dot_dimension_numbers<[1], [0], [0], [1], [0, 0, 1, 1], [], []>} : vector<128x128xbf16>, vector<128x128xbf16>, vector<128x128xf32> -> vector<128x128xf32>
    %10 = arith.addf %7, %9 : vector<128x128xf32>
    %c0_5 = arith.constant 0 : index
    %c0_6 = arith.constant 0 : index
    %11 = vector.load %arg10[%c0_5, %c0_6] : memref<128x128xf32, #tpu.memory_space<vmem>>, vector<128x128xf32>
    tpu.vector_store %arg10[%c0_5, %c0_6], %10 {strides = array<i32>} : memref<128x128xf32, #tpu.memory_space<vmem>>, vector<128x128xf32>,
    %c0_i32_7 = arith.constant 0 : i32
    %12 = arith.cmpi eq, %arg1, %c0_i32_7 : i32
    %13 = arith.extui %12 : i1 to i32
    %c0_i32_8 = arith.constant 0 : i32
    %14 = arith.cmpi ne, %13, %c0_i32_8 : i32
    scf.if %14 {
      %c0_9 = arith.constant 0 : index
      %c0_10 = arith.constant 0 : index
      %15 = vector.load %arg10[%c0_9, %c0_10] : memref<128x128xf32, #tpu.memory_space<vmem>>, vector<128x128xf32>
      %16 = arith.truncf %15 : vector<128x128xf32> to vector<128x128xbf16>
      %c0_11 = arith.constant 0 : index
      %c0_12 = arith.constant 0 : index
      %17 = vector.load %arg6[%c0_11, %c0_12] : memref<128x128xbf16, #tpu.memory_space<vmem>>, vector<128x128xbf16>
      %cst_13 = arith.constant dense<0.000000e+00> : vector<128x128xf32>
      %18 = tpu.matmul %16, %17, %cst_13 {dimension_numbers = #tpu.dot_dimension_numbers<[1], [0], [0], [1], [0, 0, 1, 1], [], []>} : vector<128x128xbf16>, vector<128x128xbf16>, vector<128x128xf32> -> vector<128x128xf32>
      %c0_14 = arith.constant 0 : index
      %c0_15 = arith.constant 0 : index
      %19 = vector.load %arg4[%c0_14, %c0_15] : memref<1x128xf32, #tpu.memory_space<vmem>>, vector<1x128xf32>
      %20 = vector.broadcast %19 : vector<1x128xf32> to vector<128x128xf32>
      %21 = arith.addf %18, %20 : vector<128x128xf32>
      %22 = arith.truncf %21 : vector<128x128xf32> to vector<128x128xbf16>
      %c0_16 = arith.constant 0 : index
      %c0_17 = arith.constant 0 : index
      %23 = vector.load %arg5[%c0_16, %c0_17] : memref<8x128xbf16, #tpu.memory_space<vmem>>, vector<8x128xbf16>
      %cst_18 = arith.constant dense<0.000000e+00> : vector<8x128xf32>
      %24 = tpu.matmul %23, %22, %cst_18 {dimension_numbers = #tpu.dot_dimension_numbers<[1], [0], [0], [1], [0, 0, 1, 1], [], []>} : vector<8x128xbf16>, vector<128x128xbf16>, vector<8x128xf32> -> vector<8x128xf32>
      %25 = vector.shape_cast %24 : vector<8x128xf32> to vector<1x8x128xf32>
      %c0_19 = arith.constant 0 : index
      %c0_20 = arith.constant 0 : index
      %c0_21 = arith.constant 0 : index
      %26 = vector.load %arg8[%c0_19, %c0_20, %c0_21] : memref<1x8x128xf32, #tpu.memory_space<vmem>>, vector<1x8x128xf32>
      tpu.vector_store %arg8[%c0_19, %c0_20, %c0_21], %25 {strides = array<i32>} : memref<1x8x128xf32, #tpu.memory_space<vmem>>, vector<1x8x128xf32>,
      %c0_22 = arith.constant 0 : index
      %c0_23 = arith.constant 0 : index
      %27 = vector.load %arg7[%c0_22, %c0_23] : memref<128x128xbf16, #tpu.memory_space<vmem>>, vector<128x128xbf16>
      %cst_24 = arith.constant dense<0.000000e+00> : vector<128x128xf32>
      %28 = tpu.matmul %22, %27, %cst_24 {dimension_numbers = #tpu.dot_dimension_numbers<[1], [0], [0], [1], [0, 0, 1, 1], [], []>} : vector<128x128xbf16>, vector<128x128xbf16>, vector<128x128xf32> -> vector<128x128xf32>
      %29 = arith.truncf %28 : vector<128x128xf32> to vector<128x128xbf16>
      %c0_25 = arith.constant 0 : index
      %c0_26 = arith.constant 0 : index
      %30 = vector.load %arg9[%c0_25, %c0_26] : memref<128x128xbf16, #tpu.memory_space<vmem>>, vector<128x128xbf16>
      tpu.vector_store %arg9[%c0_25, %c0_26], %29 {strides = array<i32>} : memref<128x128xbf16, #tpu.memory_space<vmem>>, vector<128x128xbf16>,
    } else {
    }
    return
  }
  func.func @transform_0(%arg0: i32, %arg1: i32) -> (i32, i32) {
    %c0_i32 = arith.constant 0 : i32
    return %arg0, %arg1 : i32, i32
  }
  func.func @transform_1(%arg0: i32, %arg1: i32) -> (i32, i32) {
    %c0_i32 = arith.constant 0 : i32
    %c0_i32_0 = arith.constant 0 : i32
    %c0_i32_1 = arith.constant 0 : i32
    return %c0_i32, %c0_i32_0 : i32, i32
  }
  func.func @transform_2(%arg0: i32, %arg1: i32) -> (i32, i32) {
    %c0_i32 = arith.constant 0 : i32
    %c0_i32_0 = arith.constant 0 : i32
    %c0_i32_1 = arith.constant 0 : i32
    return %c0_i32, %c0_i32_0 : i32, i32
  }
  func.func @transform_3(%arg0: i32, %arg1: i32) -> (i32, i32) {
    %c0_i32 = arith.constant 0 : i32
    %c0_i32_0 = arith.constant 0 : i32
    return %c0_i32, %arg0 : i32, i32
  }
  func.func @transform_4(%arg0: i32, %arg1: i32) -> (i32, i32) {
    %c0_i32 = arith.constant 0 : i32
    %c0_i32_0 = arith.constant 0 : i32
    %c0_i32_1 = arith.constant 0 : i32
    return %c0_i32, %c0_i32_0 : i32, i32
  }
  func.func @transform_5(%arg0: i32, %arg1: i32) -> (i32, i32) {
    %c0_i32 = arith.constant 0 : i32
    %c0_i32_0 = arith.constant 0 : i32
    %c0_i32_1 = arith.constant 0 : i32
    return %c0_i32, %c0_i32_0 : i32, i32
  }
  func.func @transform_6(%arg0: i32, %arg1: i32) -> (i32, i32, i32) {
    %c0_i32 = arith.constant 0 : i32
    %c0_i32_0 = arith.constant 0 : i32
    %c0_i32_1 = arith.constant 0 : i32
    return %arg0, %c0_i32, %c0_i32_0 : i32, i32, i32
  }
  func.func @transform_7(%arg0: i32, %arg1: i32) -> (i32, i32) {
    %c0_i32 = arith.constant 0 : i32
    %c0_i32_0 = arith.constant 0 : i32
    return %arg0, %c0_i32 : i32, i32
  }
}

</mosaic_0001>

<bundles_post_ra>
// kernel: tpu_custom_call.1
= control target key start
LH: loop header
LB: loop body
LE: loop exit
PB: predicated region body
PF: predicated region fallthrough
CT: control target
= control target key end

     0   :  { %13 = vsyncpa [#allocation4], 0  ;;  %s1544_s0 = inlined_call_operand.hbm [shape: bf16[128,128], index: 0, kind: input, shape index: {}]   ;;  %s1545_s1 = inlined_call_operand.hbm [shape: bf16[128,128], index: 1, kind: input, shape index: {}]   ;;  %s1546_s2 = inlined_call_operand.vmem [shape: f32[1,128], index: 2, kind: input, shape index: {}]   ;;  %s1547_s3 = inlined_call_operand.vmem [shape: bf16[8,128], index: 3, kind: input, shape index: {}]   ;;  %s1548_s4 = inlined_call_operand.hbm [shape: bf16[128,128], index: 4, kind: input, shape index: {}]   ;;  %s1549_s5 = inlined_call_operand.hbm [shape: bf16[128,128], index: 5, kind: input, shape index: {}]   ;;  %s1550_s6 = inlined_call_operand.hbm [shape: f32[1,8,128], index: 6, kind: output, shape index: {0}]   ;;  %s1551_s7 = inlined_call_operand.hbm [shape: bf16[128,128], index: 7, kind: output, shape index: {1}]  }
   0x1   :  { %14 = vsyncpa [#allocation7], 0 }
   0x2   :  { %15 = vsyncpa [#allocation10], 0 }
   0x3   :  { %16 = vsyncpa [#allocation5], 0 }
   0x4   :  { %17 = vsyncpa [#allocation13], 0  ;;  %s1371_s24 = smov [#allocation6]   ;;  %s1372_s26 = smov [#allocation3]  }
   0x5   :  { %s35_s25 = sshll.u32 %s1371_s24, 4  ;;  %s23_s27 = sshll.u32 %s1372_s26, 4  ;;  %s36_s25 = int_to_ptr.vmem [resolvable:$true] %s35_s25  ;;  %s1421_s27 = int_to_ptr.vmem [resolvable:$true] %s23_s27 }
   0x6   :  { %s1229_s30 = scalar_lea.hbm %s1545_s1, 1024 }
   0x7   :  { %p1230_p0 = scmp.ne.s32.totalorder %s1545_s1, %s1229_s30  ;;  %p1233_p1 = scmp.lt.u32.totalorder %s1229_s30, %s1545_s1 }
   0x9   :  { %p1235_p2 = pnand %p1233_p1, %p1230_p0 }
   0xb   :  { %1238 = shalt.err (!%p1235_p2)
}
   0xc   :  { %s1239_s12 = scalar_lea.vmem %s36_s25, 1024  ;;  %p1244_p4 = scmp.lt.s32.totalorder %s36_s25, %s36_s25 }
   0xd   :  { %p1240_p3 = scmp.ne.s32.totalorder %s36_s25, %s1239_s12  ;;  %p1245_p5 = scmp.lt.s32.totalorder %s1239_s12, %s1239_s12 }
   0xf   :  { %p1246_p6 = por %p1245_p5, %p1244_p4 }
  0x11   :  { %p1247_p7 = pnand %p1246_p6, %p1240_p3 }
  0x13   :  { %1250 = shalt.err (!%p1247_p7)
}
  0x14   :  { %s1373_s13 = smov 64   ;;  %s1374_s14 = smov 4  }
  0x15   :  { %41 = dma.hbm_to_vmem [thread:$0]  %s1545_s1, 1024, %s36_s25, [#allocation7], %s1373_s13, %s1373_s13, %s1374_s14  }
  0x16   :  { %s1251_s19 = scalar_lea.hbm %s1544_s0, 1024 }
  0x17   :  { %p1252_p8 = scmp.ne.s32.totalorder %s1544_s0, %s1251_s19  ;;  %p1255_p9 = scmp.lt.u32.totalorder %s1251_s19, %s1544_s0 }
  0x19   :  { %p1257_p10 = pnand %p1255_p9, %p1252_p8 }
  0x1b   :  { %1260 = shalt.err (!%p1257_p10)
}
  0x1c   :  { %s1261_s24 = scalar_lea.vmem %s1421_s27, 1024  ;;  %p1266_p12 = scmp.lt.s32.totalorder %s1421_s27, %s1421_s27 }
  0x1d   :  { %p1262_p11 = scmp.ne.s32.totalorder %s1421_s27, %s1261_s24  ;;  %p1267_p13 = scmp.lt.s32.totalorder %s1261_s24, %s1261_s24 }
  0x1f   :  { %p1268_p0 = por %p1267_p13, %p1266_p12 }
  0x21   :  { %p1269_p1 = pnand %p1268_p0, %p1262_p11 }
  0x23   :  { %1272 = shalt.err (!%p1269_p1)
}
  0x24   :  { %29 = dma.hbm_to_vmem [thread:$0]  %s1544_s0, 1024, %s1421_s27, [#allocation4], %s1373_s13, %s1373_s13, %s1374_s14  }
  0x25   :  { %s1375_s26 = smov [#allocation8]   ;;  %s1376_s29 = smov [#allocation9]  }
  0x26   :  { %s51_s28 = sshll.u32 %s1375_s26, 4  ;;  %s63_s30 = sshll.u32 %s1376_s29, 4  ;;  %s52_s28 = int_to_ptr.vmem [resolvable:$true] %s51_s28  ;;  %s1458_s30 = int_to_ptr.vmem [resolvable:$true] %s63_s30 }
  0x27   :  { %s1273_s10 = scalar_lea.hbm %s1548_s4, 1024 }
  0x28   :  { %p1274_p2 = scmp.ne.s32.totalorder %s1548_s4, %s1273_s10  ;;  %p1277_p3 = scmp.lt.u32.totalorder %s1273_s10, %s1548_s4 }
  0x2a   :  { %p1279_p4 = pnand %p1277_p3, %p1274_p2 }
  0x2c   :  { %1282 = shalt.err (!%p1279_p4)
}
  0x2d   :  { %s1283_s0 = scalar_lea.vmem %s52_s28, 1024  ;;  %p1288_p6 = scmp.lt.s32.totalorder %s52_s28, %s52_s28 }
  0x2e   :  { %p1284_p5 = scmp.ne.s32.totalorder %s52_s28, %s1283_s0  ;;  %p1289_p7 = scmp.lt.s32.totalorder %s1283_s0, %s1283_s0 }
  0x30   :  { %p1290_p8 = por %p1289_p7, %p1288_p6 }
  0x32   :  { %p1291_p9 = pnand %p1290_p8, %p1284_p5 }
  0x34   :  { %1294 = shalt.err (!%p1291_p9)
}
  0x35   :  { %57 = dma.hbm_to_vmem [thread:$0]  %s1548_s4, 1024, %s52_s28, [#allocation7], %s1373_s13, %s1373_s13, %s1374_s14  }
  0x36   :  { %s1295_s20 = scalar_lea.hbm %s1549_s5, 1024 }
  0x37   :  { %p1296_p10 = scmp.ne.s32.totalorder %s1549_s5, %s1295_s20  ;;  %p1299_p11 = scmp.lt.u32.totalorder %s1295_s20, %s1549_s5 }
  0x39   :  { %p1301_p12 = pnand %p1299_p11, %p1296_p10 }
  0x3b   :  { %1304 = shalt.err (!%p1301_p12)
}
  0x3c   :  { %s1305_s1 = scalar_lea.vmem %s1458_s30, 1024  ;;  %p1310_p0 = scmp.lt.s32.totalorder %s1458_s30, %s1458_s30 }
  0x3d   :  { %p1306_p13 = scmp.ne.s32.totalorder %s1458_s30, %s1305_s1  ;;  %p1311_p1 = scmp.lt.s32.totalorder %s1305_s1, %s1305_s1 }
  0x3f   :  { %p1312_p2 = por %p1311_p1, %p1310_p0 }
  0x41   :  { %p1313_p3 = pnand %p1312_p2, %p1306_p13 }
  0x43   :  { %1316 = shalt.err (!%p1313_p3)
}
  0x44   :  { %69 = dma.hbm_to_vmem [thread:$0]  %s1549_s5, 1024, %s1458_s30, [#allocation10], %s1373_s13, %s1373_s13, %s1374_s14  }
  0x45   :  { %1361 = dma.done.wait [#allocation4], 1024  }
  0x46   :  { %1362 = vsyncadd [#allocation4], 4294966272 }
  0x47   :  { %1363 = dma.done.wait [#allocation7], 2048  }
  0x48   :  { %1364 = vsyncadd [#allocation7], 4294965248 }
  0x49   :  { %1365 = dma.done.wait [#allocation10], 1024  }
  0x4a   :  { %1366 = vsyncadd [#allocation10], 4294966272  ;;  %v1197_v0 = vld [vmem:[#allocation6] sm:$0xff]   ;;  %v1198_v1 = vld [vmem:[#allocation6 + $0x8] sm:$0xff]   ;;  %v1377_v56 = vmov 0.0   ;;  %vm1378_vm0 = vmmov 0  }
  0x4b   :  { %1071 = vmatprep.subr.bf16.mxu0 %v1197_v0  ;;  %v1199_v2 = vld [vmem:[#allocation6 + $0x10] sm:$0xff]   ;;  %v1200_v3 = vld [vmem:[#allocation6 + $0x18] sm:$0xff]   ;;  %v1205_v4 = vld [vmem:[#allocation3] sm:$0xff]   ;;  %s1380_s30 = smov [#allocation11]  }
  0x4c   :  { %1072 = vmatpush3.bf16.msra.mxu0 %v1197_v0  ;;  %1087 = vmatprep.mubr.bf16.mxu0 %v1205_v4  ;;  %v1201_v5 = vld [vmem:[#allocation6 + $0x20] sm:$0xff]   ;;  %v1202_v6 = vld [vmem:[#allocation6 + $0x28] sm:$0xff]   ;;  %v1203_v9 = vld [vmem:[#allocation6 + $0x30] sm:$0xff]   ;;  %s873_s8 = sshll.u32 %s1380_s30, 4  ;;  %s1510_s8 = int_to_ptr.vmem [resolvable:$true] %s873_s8 }
  0x4d   :  { %1073 = vmatprep.subr.bf16.mxu0 %v1198_v1  ;;  %v1213_v7 = vld [vmem:[#allocation8] sm:$0xff]   ;;  %v1214_v8 = vld [vmem:[#allocation8 + $0x8] sm:$0xff]   ;;  %v1215_v10 = vld [vmem:[#allocation8 + $0x10] sm:$0xff]  }
  0x4e   :  { %1103 = vmatprep.subr.bf16.mxu1 %v1213_v7  ;;  %v1204_v11 = vld [vmem:[#allocation6 + $0x38] sm:$0xff]   ;;  %v1217_v13 = vld [vmem:[#allocation8 + $0x20] sm:$0xff]   ;;  %v1206_v14 = vld [vmem:[#allocation3 + $0x8] sm:$0xff]  }
  0x4f   :  { %1104 = vmatpush3.bf16.msra.mxu1 %v1213_v7  ;;  %v1216_v12 = vld [vmem:[#allocation8 + $0x18] sm:$0xff]   ;;  %v1207_v15 = vld [vmem:[#allocation3 + $0x10] sm:$0xff]   ;;  %v1218_v16 = vld [vmem:[#allocation8 + $0x28] sm:$0xff]  }
  0x50   :  { %1074 = vmatpush3.bf16.msra.mxu0 %v1198_v1  ;;  %1105 = vmatprep.subr.bf16.mxu1 %v1214_v8  ;;  %v1219_v17 = vld [vmem:[#allocation8 + $0x30] sm:$0xff]   ;;  %v1208_v18 = vld [vmem:[#allocation3 + $0x18] sm:$0xff]   ;;  %v1209_v19 = vld [vmem:[#allocation3 + $0x20] sm:$0xff]  }
  0x51   :  { %1075 = vmatprep.subr.bf16.mxu0 %v1199_v2  ;;  %v1210_v20 = vld [vmem:[#allocation3 + $0x28] sm:$0xff]   ;;  %v1211_v21 = vld [vmem:[#allocation3 + $0x30] sm:$0xff]   ;;  %v1212_v22 = vld [vmem:[#allocation3 + $0x38] sm:$0xff]  }
  0x52   :  { %v1220_v23 = vld [vmem:[#allocation8 + $0x38] sm:$0xff]   ;;  %v1221_v24 = vld [vmem:[#allocation9] sm:$0xff]   ;;  %v1222_v31 = vld [vmem:[#allocation9 + $0x8] sm:$0xff]  }
  0x53   :  { %1106 = vmatpush3.bf16.msra.mxu1 %v1214_v8  ;;  %v1223_v34 = vld [vmem:[#allocation9 + $0x10] sm:$0xff]   ;;  %v1224_v39 = vld [vmem:[#allocation9 + $0x18] sm:$0xff]   ;;  %v1225_v42 = vld [vmem:[#allocation9 + $0x20] sm:$0xff]  }
  0x54   :  { %1076 = vmatpush3.bf16.msra.mxu0 %v1199_v2  ;;  %1107 = vmatprep.subr.bf16.mxu1 %v1215_v10  ;;  %v1226_v47 = vld [vmem:[#allocation9 + $0x28] sm:$0xff]   ;;  %v1227_v54 = vld [vmem:[#allocation9 + $0x30] sm:$0xff]   ;;  %v1228_v55 = vld [vmem:[#allocation9 + $0x38] sm:$0xff]  }
  0x55   :  { %1077 = vmatprep.subr.bf16.mxu0 %v1200_v3  ;;  %v918_v58 = vld [vmem:[%s1546_s2] ss:$0 sm:$0xff] }
  0x57   :  { %1108 = vmatpush3.bf16.msra.mxu1 %v1215_v10 }
  0x58   :  { %1078 = vmatpush3.bf16.msra.mxu0 %v1200_v3  ;;  %1109 = vmatprep.subr.bf16.mxu1 %v1216_v12 }
  0x59   :  { %1079 = vmatprep.subr.bf16.mxu0 %v1201_v5 }
  0x5b   :  { %1110 = vmatpush3.bf16.msra.mxu1 %v1216_v12 }
  0x5c   :  { %1080 = vmatpush3.bf16.msra.mxu0 %v1201_v5  ;;  %1111 = vmatprep.subr.bf16.mxu1 %v1217_v13 }
  0x5d   :  { %1081 = vmatprep.subr.bf16.mxu0 %v1202_v6 }
  0x5f   :  { %1112 = vmatpush3.bf16.msra.mxu1 %v1217_v13 }
  0x60   :  { %1082 = vmatpush3.bf16.msra.mxu0 %v1202_v6  ;;  %1113 = vmatprep.subr.bf16.mxu1 %v1218_v16 }
  0x61   :  { %1083 = vmatprep.subr.bf16.mxu0 %v1203_v9 }
  0x63   :  { %1114 = vmatpush3.bf16.msra.mxu1 %v1218_v16 }
  0x64   :  { %1084 = vmatpush3.bf16.msra.mxu0 %v1203_v9  ;;  %1115 = vmatprep.subr.bf16.mxu1 %v1219_v17 }
  0x65   :  { %1085 = vmatprep.subr.bf16.mxu0 %v1204_v11 }
  0x67   :  { %1116 = vmatpush3.bf16.msra.mxu1 %v1219_v17 }
  0x68   :  { %1086 = vmatpush3.bf16.msra.mxu0 %v1204_v11  ;;  %1117 = vmatprep.subr.bf16.mxu1 %v1220_v23 }
  0x69   :  { %1135 = vmatprep.subr.bf16.mxu0 %v1377_v56 }
  0x6b   :  { %1088 = vmatmul.mubr.bf16.vlgmr.msra.gmra.mrb[0].mxu0 %v1206_v14  ;;  %1118 = vmatpush3.bf16.msra.mxu1 %v1220_v23 }
  0x6c   :  { %1091 = vmatprep.mubr.bf16.mxu0 %v1207_v15  ;;  %1155 = vmatprep.subr.bf16.mxu1 %v1221_v24 }
  0x73   :  { %1092 = vmatmul.mubr.bf16.gmra.mrb[4].mxu0 %v1208_v18 }
  0x74   :  { %1095 = vmatprep.mubr.bf16.mxu0 %v1209_v19 }
  0x7b   :  { %1096 = vmatmul.mubr.bf16.gmra.mrb[8].mxu0 %v1210_v20 }
  0x7c   :  { %1099 = vmatprep.mubr.bf16.mxu0 %v1211_v21 }
  0x83   :  { %1100 = vmatmul.mubr.bf16.gmra.mrb[12].mxu0 %v1212_v22 }
  0x84   :  { %1151 = vmatprep.mubr.msk.bf16.mxu0 %vm1378_vm0, %v1377_v56 }
 0x13e   :  { %v1089_v25 = vpop.f32.mrb[0].mxu0 }
 0x13f   :  { %v286_v26 = vpop.f32.mrb[1].mxu0 }
 0x140   :  { %v1090_v27 = vpop.f32.mrb[2].mxu0 }
 0x141   :  { %v401_v28 = vpack.c.bf16 %v1090_v27, %v1089_v25  ;;  %v289_v29 = vpop.f32.mrb[3].mxu0 }
 0x142   :  { %v400_v30 = vpack.c.bf16 %v289_v29, %v286_v26 }
 0x144   :  { %1119 = vmatprep.mubr.bf16.mxu1 %v400_v30 }
 0x145   :  { %1120 = vmatmul.mubr.bf16.vlgmr.msra.gmra.mrb[0].mxu1 %v401_v28 }
 0x146   :  { %v1093_v32 = vpop.f32.mrb[4].mxu0  ;;  %1156 = vmatpush3.bf16.msra.mxu1 %v1221_v24 }
 0x147   :  { %v302_v33 = vpop.f32.mrb[5].mxu0  ;;  %1157 = vmatprep.subr.bf16.mxu1 %v1222_v31 }
 0x148   :  { %v1094_v35 = vpop.f32.mrb[6].mxu0 }
 0x149   :  { %v403_v36 = vpack.c.bf16 %v1094_v35, %v1093_v32  ;;  %v305_v37 = vpop.f32.mrb[7].mxu0 }
 0x14a   :  { %v402_v38 = vpack.c.bf16 %v305_v37, %v302_v33  ;;  %1158 = vmatpush3.bf16.msra.mxu1 %v1222_v31 }
 0x14b   :  { %1159 = vmatprep.subr.bf16.mxu1 %v1223_v34 }
 0x14c   :  { %1123 = vmatprep.mubr.bf16.mxu1 %v402_v38 }
 0x14d   :  { %1124 = vmatmul.mubr.bf16.gmra.mrb[4].mxu1 %v403_v36 }
 0x14e   :  { %v1097_v40 = vpop.f32.mrb[8].mxu0  ;;  %1160 = vmatpush3.bf16.msra.mxu1 %v1223_v34  ;;  %v584_v34 = vld [vmem:[%s1547_s3] sm:$0xf]  ;;  %s1379_s3 = smov [#allocation12]  }
 0x14f   :  { %v318_v41 = vpop.f32.mrb[9].mxu0  ;;  %1161 = vmatprep.subr.bf16.mxu1 %v1224_v39  ;;  %s882_s29 = sshll.u32 %s1379_s3, 4  ;;  %s883_s29 = int_to_ptr.vmem [resolvable:$true] %s882_s29 }
 0x150   :  { %v1098_v43 = vpop.f32.mrb[10].mxu0  ;;  %s1317_s9 = scalar_lea.vmem %s883_s29, 1024  ;;  %p1322_p5 = scmp.lt.s32.totalorder %s883_s29, %s883_s29 }
 0x151   :  { %v405_v44 = vpack.c.bf16 %v1098_v43, %v1097_v40  ;;  %v321_v45 = vpop.f32.mrb[11].mxu0  ;;  %p1318_p4 = scmp.ne.s32.totalorder %s883_s29, %s1317_s9  ;;  %p1323_p6 = scmp.lt.s32.totalorder %s1317_s9, %s1317_s9 }
 0x152   :  { %v404_v46 = vpack.c.bf16 %v321_v45, %v318_v41  ;;  %1162 = vmatpush3.bf16.msra.mxu1 %v1224_v39 }
 0x153   :  { %1163 = vmatprep.subr.bf16.mxu1 %v1225_v42  ;;  %p1324_p7 = por %p1323_p6, %p1322_p5 }
 0x154   :  { %1127 = vmatprep.mubr.bf16.mxu1 %v404_v46 }
 0x155   :  { %1128 = vmatmul.mubr.bf16.gmra.mrb[8].mxu1 %v405_v44  ;;  %p1325_p8 = pnand %p1324_p7, %p1318_p4 }
 0x156   :  { %v1101_v48 = vpop.f32.mrb[12].mxu0  ;;  %1164 = vmatpush3.bf16.msra.mxu1 %v1225_v42 }
 0x157   :  { %v334_v49 = vpop.f32.mrb[13].mxu0  ;;  %1165 = vmatprep.subr.bf16.mxu1 %v1226_v47 }
 0x158   :  { %v1102_v50 = vpop.f32.mrb[14].mxu0 }
 0x159   :  { %v407_v51 = vpack.c.bf16 %v1102_v50, %v1101_v48  ;;  %v337_v52 = vpop.f32.mrb[15].mxu0 }
 0x15a   :  { %v406_v53 = vpack.c.bf16 %v337_v52, %v334_v49  ;;  %1166 = vmatpush3.bf16.msra.mxu1 %v1226_v47 }
 0x15b   :  { %1167 = vmatprep.subr.bf16.mxu1 %v1227_v54 }
 0x15c   :  { %1131 = vmatprep.mubr.bf16.mxu1 %v406_v53 }
 0x15d   :  { %1132 = vmatmul.mubr.bf16.gmra.mrb[12].mxu1 %v407_v51 }
 0x15e   :  { %1168 = vmatpush3.bf16.msra.mxu1 %v1227_v54 }
 0x15f   :  { %1169 = vmatprep.subr.bf16.mxu1 %v1228_v55 }
 0x162   :  { %1170 = vmatpush3.bf16.msra.mxu1 %v1228_v55 }
 0x218   :  { %v1121_v57 = vpop.f32.mrb[0].mxu1 }
 0x219   :  { %v513_v59 = vpop.f32.mrb[1].mxu1  ;;  %v522_v61 = vadd.f32 %v1121_v57, %v918_v58 }
 0x21a   :  { %v1122_v60 = vpop.f32.mrb[2].mxu1  ;;  %v514_v0 = vadd.f32 %v918_v58, %v513_v59 }
 0x21b   :  { %v525_v62 = vadd.f32 %v1122_v60, %v918_v58  ;;  %v516_v63 = vpop.f32.mrb[3].mxu1 }
 0x21c   :  { %v517_v1 = vadd.f32 %v918_v58, %v516_v63 }
 0x21d   :  { %v577_v2 = vpack.c.bf16 %v525_v62, %v522_v61 }
 0x21e   :  { %v576_v3 = vpack.c.bf16 %v517_v1, %v514_v0 }
 0x220   :  { %v1125_v4 = vpop.f32.mrb[4].mxu1  ;;  %1136 = vmatpush3.bf16.msra.mxu0 %v576_v3  ;;  %1171 = vmatprep.mubr.bf16.mxu1 %v576_v3 }
 0x221   :  { %v529_v5 = vpop.f32.mrb[5].mxu1  ;;  %1172 = vmatmul.mubr.bf16.vlgmr.msra.gmra.mrb[16].mxu1 %v577_v2  ;;  %1137 = vmatprep.subr.bf16.mxu0 %v1377_v56  ;;  %v538_v7 = vadd.f32 %v1125_v4, %v918_v58 }
 0x222   :  { %v1126_v6 = vpop.f32.mrb[6].mxu1  ;;  %v530_v10 = vadd.f32 %v918_v58, %v529_v5 }
 0x223   :  { %v541_v8 = vadd.f32 %v1126_v6, %v918_v58  ;;  %v532_v9 = vpop.f32.mrb[7].mxu1 }
 0x224   :  { %v533_v11 = vadd.f32 %v918_v58, %v532_v9  ;;  %1138 = vmatpush3.bf16.msra.mxu0 %v577_v2 }
 0x225   :  { %v579_v12 = vpack.c.bf16 %v541_v8, %v538_v7  ;;  %1139 = vmatprep.subr.bf16.mxu0 %v1377_v56 }
 0x226   :  { %v578_v13 = vpack.c.bf16 %v533_v11, %v530_v10 }
 0x228   :  { %v1129_v14 = vpop.f32.mrb[8].mxu1  ;;  %1140 = vmatpush3.bf16.msra.mxu0 %v578_v13  ;;  %1175 = vmatprep.mubr.bf16.mxu1 %v578_v13 }
 0x229   :  { %v545_v15 = vpop.f32.mrb[9].mxu1  ;;  %1176 = vmatmul.mubr.bf16.gmra.mrb[20].mxu1 %v579_v12  ;;  %1141 = vmatprep.subr.bf16.mxu0 %v1377_v56  ;;  %v554_v17 = vadd.f32 %v1129_v14, %v918_v58 }
 0x22a   :  { %v1130_v16 = vpop.f32.mrb[10].mxu1  ;;  %v546_v20 = vadd.f32 %v918_v58, %v545_v15 }
 0x22b   :  { %v557_v18 = vadd.f32 %v1130_v16, %v918_v58  ;;  %v548_v19 = vpop.f32.mrb[11].mxu1 }
 0x22c   :  { %v549_v21 = vadd.f32 %v918_v58, %v548_v19  ;;  %1142 = vmatpush3.bf16.msra.mxu0 %v579_v12 }
 0x22d   :  { %v581_v22 = vpack.c.bf16 %v557_v18, %v554_v17  ;;  %1143 = vmatprep.subr.bf16.mxu0 %v1377_v56 }
 0x22e   :  { %v580_v23 = vpack.c.bf16 %v549_v21, %v546_v20 }
 0x230   :  { %v1133_v24 = vpop.f32.mrb[12].mxu1  ;;  %1144 = vmatpush3.bf16.msra.mxu0 %v580_v23  ;;  %1179 = vmatprep.mubr.bf16.mxu1 %v580_v23 }
 0x231   :  { %v561_v25 = vpop.f32.mrb[13].mxu1  ;;  %1180 = vmatmul.mubr.bf16.gmra.mrb[24].mxu1 %v581_v22  ;;  %1145 = vmatprep.subr.bf16.mxu0 %v1377_v56  ;;  %v570_v27 = vadd.f32 %v1133_v24, %v918_v58 }
 0x232   :  { %v1134_v26 = vpop.f32.mrb[14].mxu1  ;;  %v562_v30 = vadd.f32 %v918_v58, %v561_v25 }
 0x233   :  { %v573_v28 = vadd.f32 %v1134_v26, %v918_v58  ;;  %v564_v29 = vpop.f32.mrb[15].mxu1 }
 0x234   :  { %v565_v31 = vadd.f32 %v918_v58, %v564_v29  ;;  %1146 = vmatpush3.bf16.msra.mxu0 %v581_v22 }
 0x235   :  { %v583_v32 = vpack.c.bf16 %v573_v28, %v570_v27  ;;  %1147 = vmatprep.subr.bf16.mxu0 %v1377_v56 }
 0x236   :  { %v582_v33 = vpack.c.bf16 %v565_v31, %v562_v30 }
 0x238   :  { %1148 = vmatpush3.bf16.msra.mxu0 %v582_v33  ;;  %1183 = vmatprep.mubr.bf16.mxu1 %v582_v33 }
 0x239   :  { %1184 = vmatmul.mubr.bf16.gmra.mrb[28].mxu1 %v583_v32  ;;  %1149 = vmatprep.subr.bf16.mxu0 %v1377_v56 }
 0x23c   :  { %1150 = vmatpush3.bf16.msra.mxu0 %v583_v32 }
 0x23f   :  { %1152 = vmatmul.mubr.bf16.vlgmr.msra.gmra.mrb[16].mxu0 %v584_v34 }
 0x2f4   :  { %v1173_v35 = vpop.f32.mrb[16].mxu1 }
 0x2f5   :  { %v724_v36 = vpop.f32.mrb[17].mxu1 }
 0x2f6   :  { %v1174_v37 = vpop.f32.mrb[18].mxu1 }
 0x2f7   :  { %v975_v38 = vpack.c.bf16 %v1174_v37, %v1173_v35  ;;  %v727_v39 = vpop.f32.mrb[19].mxu1 }
 0x2f8   :  { %v970_v40 = vpack.c.bf16 %v727_v39, %v724_v36 }
 0x2f9   :  { %1007 = vst [vmem:[#allocation12 + $0x8] sm:$0xff] %v975_v38  }
 0x2fa   :  { %971 = vst [vmem:[#allocation12] sm:$0xff] %v970_v40  }
 0x2fc   :  { %v1177_v41 = vpop.f32.mrb[20].mxu1 }
 0x2fd   :  { %v740_v42 = vpop.f32.mrb[21].mxu1 }
 0x2fe   :  { %v1178_v43 = vpop.f32.mrb[22].mxu1 }
 0x2ff   :  { %v985_v44 = vpack.c.bf16 %v1178_v43, %v1177_v41  ;;  %v743_v45 = vpop.f32.mrb[23].mxu1 }
 0x300   :  { %v980_v46 = vpack.c.bf16 %v743_v45, %v740_v42 }
 0x301   :  { %1009 = vst [vmem:[#allocation12 + $0x18] sm:$0xff] %v985_v44  }
 0x302   :  { %1008 = vst [vmem:[#allocation12 + $0x10] sm:$0xff] %v980_v46  }
 0x304   :  { %v1181_v47 = vpop.f32.mrb[24].mxu1 }
 0x305   :  { %v756_v48 = vpop.f32.mrb[25].mxu1 }
 0x306   :  { %v1182_v49 = vpop.f32.mrb[26].mxu1 }
 0x307   :  { %v995_v50 = vpack.c.bf16 %v1182_v49, %v1181_v47  ;;  %v759_v51 = vpop.f32.mrb[27].mxu1 }
 0x308   :  { %v990_v52 = vpack.c.bf16 %v759_v51, %v756_v48 }
 0x309   :  { %1011 = vst [vmem:[#allocation12 + $0x28] sm:$0xff] %v995_v50  }
 0x30a   :  { %1010 = vst [vmem:[#allocation12 + $0x20] sm:$0xff] %v990_v52  }
 0x30c   :  { %v1185_v53 = vpop.f32.mrb[28].mxu1 }
 0x30d   :  { %v772_v54 = vpop.f32.mrb[29].mxu1 }
 0x30e   :  { %v1186_v55 = vpop.f32.mrb[30].mxu1 }
 0x30f   :  { %v1005_v56 = vpack.c.bf16 %v1186_v55, %v1185_v53  ;;  %v775_v57 = vpop.f32.mrb[31].mxu1 }
 0x310   :  { %v1000_v58 = vpack.c.bf16 %v775_v57, %v772_v54 }
 0x311   :  { %1013 = vst [vmem:[#allocation12 + $0x38] sm:$0xff] %v1005_v56  }
 0x312   :  { %1012 = vst [vmem:[#allocation12 + $0x30] sm:$0xff] %v1000_v58   ;;  %v619_v59 = vpop.f32.mrb[16].mxu0 }
 0x313   :  { %625 = vst [vmem:[#allocation11] sm:$0xff] %v619_v59  ;;  %v1153_v60 = vpop.f32.mrb[17].mxu0 }
 0x314   :  { %1328 = shalt.err (!%p1325_p8)
}
 0x315   :  { %s1329_s12 = scalar_lea.hbm %s1551_s7, 1024 }
 0x316   :  { %p1330_p9 = scmp.ne.s32.totalorder %s1551_s7, %s1329_s12  ;;  %p1333_p10 = scmp.lt.u32.totalorder %s1329_s12, %s1551_s7 }
 0x318   :  { %p1335_p11 = pnand %p1333_p10, %p1330_p9 }
 0x31a   :  { %1338 = shalt.err (!%p1335_p11)
}
 0x31b   :  { %888 = dma.vmem_to_hbm [thread:$0]  %s883_s29, 1024, %s1551_s7, [#allocation13], %s1373_s13, %s1373_s13, %s1374_s14   ;;  %v622_v61 = vpop.f32.mrb[18].mxu0 }
 0x31c   :  { %s1339_s19 = scalar_lea.vmem %s1510_s8, 128  ;;  %p1344_p13 = scmp.lt.s32.totalorder %s1510_s8, %s1510_s8 }
 0x31d   :  { %p1340_p12 = scmp.ne.s32.totalorder %s1510_s8, %s1339_s19  ;;  %p1345_p0 = scmp.lt.s32.totalorder %s1339_s19, %s1339_s19 }
 0x31f   :  { %p1346_p1 = por %p1345_p0, %p1344_p13 }
 0x321   :  { %p1347_p2 = pnand %p1346_p1, %p1340_p12 }
 0x323   :  { %1350 = shalt.err (!%p1347_p2)
}
 0x324   :  { %s1351_s22 = scalar_lea.hbm %s1550_s6, 128 }
 0x325   :  { %p1352_p3 = scmp.ne.s32.totalorder %s1550_s6, %s1351_s22  ;;  %p1355_p4 = scmp.lt.u32.totalorder %s1351_s22, %s1550_s6 }
 0x327   :  { %p1357_p5 = pnand %p1355_p4, %p1352_p3 }
 0x329   :  { %1360 = shalt.err (!%p1357_p5)
}
 0x32a   :  { %876 = dma.vmem_to_hbm [thread:$0]  %s1510_s8, 128, %s1550_s6, [#allocation5]   ;;  %v1154_v62 = vpop.f32.mrb[19].mxu0 }
 0x32b   :  { %1367 = dma.done.wait [#allocation5], 128  }
 0x32c   :  { %1368 = vsyncadd [#allocation5], 4294967168 }
 0x32d   :  { %1369 = dma.done.wait [#allocation13], 1024  }
 0x32e   :  { %1370 = vsyncadd [#allocation13], 4294966272 }
 0x32f   :  { %895 = vsyncpa [#allocation4], 1 }
 0x330   :  { %896 = vsyncpa [#allocation7], 1 }
 0x331   :  { %897 = vsyncpa [#allocation10], 1 }
 0x332   :  { %898 = vsyncpa [#allocation5], 1 }
 0x333   :  { %899 = vsyncpa [#allocation13], 1 }

</bundles_post_ra>
